<compile_context>
chip_gen: v5e
topology: v5e:2x2
jax: 0.10.0
libtpu: 0.0.40
codegen_flags: <defaults>
</compile_context>

<pallas_src>
import jax
import jax.numpy as jnp
from jax.experimental import pallas as pl
from jax.experimental.pallas import tpu as pltpu


_LANE = 128      # lane width (last-dim alignment target for weight outputs / store)
_SUBLANE = 8     # f32 sublane height (batch-tile alignment target)


def _cdiv(a, b):
    return -(-a // b)


def _round_up(v, m):
    return _cdiv(v, m) * m


def _make_mlp_kernel(n_hidden):
    """Fused kernel: n_hidden x (Linear+ReLU) trunk then ONE fused 3-head matmul."""

    def kernel(*refs):
        # refs layout:
        #   x_ref                                   (tb, input_dim)   batch-tiled
        #   w_ref * n_hidden                        resident trunk weights (in, out)
        #   b_stack_ref                             (n_hidden, dim_p) stacked trunk biases
        #   w_head_ref, b_head_ref                  fused 3-head weight / bias
        #   out_ref                                 (tb, head_out_p)  batch-tiled
        x_ref = refs[0]
        w_refs = refs[1:1 + n_hidden]
        b_stack_ref = refs[1 + n_hidden]
        w_head_ref = refs[2 + n_hidden]
        b_head_ref = refs[3 + n_hidden]
        out_ref = refs[4 + n_hidden]

        h = x_ref[...]
        # hidden trunk: Linear -> ReLU (norm='none', activ='relu')
        for l in range(n_hidden):
            h = jnp.dot(h, w_refs[l][...], preferred_element_type=jnp.float32)
            h = jnp.maximum(h + b_stack_ref[l:l + 1, :], 0.0)
        # fused output heads: single Linear, no activation, lane-dense (128-padded) store
        out_ref[...] = (
            jnp.dot(h, w_head_ref[...], preferred_element_type=jnp.float32)
            + b_head_ref[...]
        ).astype(out_ref.dtype)

    return kernel


def dynamic_mlp_forward(x, hidden_params, head_params, *, max_batch_tile=1024,
                        single_buffer_weights=None):
    """Fused DynamicMlp forward via pallas_call.

    Args:
      x: (B, input_dim) float32 — already flattened (x.view(B, -1)).
      hidden_params: list of (W_T (in, out), b (1, out)) for the trunk.
      head_params: list of 3 tuples (W_T (dim, output_dim), b (1, output_dim))
                   for (output_prev, output_now, output_next).
      max_batch_tile: soft cap on the batch tile size (rows).
      single_buffer_weights: force single-buffered resident weights; default
                   auto-enables only when the resident weights exceed 4 MiB.
    Returns:
      (out_prev, out_now, out_next), each (B, output_dim) float32.
    """
    B, input_dim = x.shape
    dim = hidden_params[0][0].shape[1]
    output_dim = head_params[0][0].shape[1]
    n_hidden = len(hidden_params)
    f32 = jnp.float32

    # ---- lane-friendly padded sizes (OUTPUT dims of weights only) -----------
    dim_align = 256 if dim >= 256 else _LANE   # 256-align big dims for v6e/v7x MXU
    dim_p = _round_up(dim, dim_align)
    head_out = 3 * output_dim
    head_out_p = _round_up(head_out, _LANE)    # lane-dense output store

    def _pad2(a, rows, cols):
        a = a.astype(f32)
        if a.shape == (rows, cols):
            return a
        return jnp.zeros((rows, cols), f32).at[:a.shape[0], :a.shape[1]].set(a)

    # ---- trunk weights: first layer keeps native input_dim rows -------------
    trunk_w = []
    prev_rows = input_dim
    for (w, _) in hidden_params:
        trunk_w.append(_pad2(w, prev_rows, dim_p))
        prev_rows = dim_p

    # ---- trunk biases stacked into ONE resident array -----------------------
    b_stack = jnp.zeros((max(n_hidden, 1), dim_p), f32)
    for l, (_, b) in enumerate(hidden_params):
        b_stack = b_stack.at[l, :b.shape[-1]].set(b.reshape(-1).astype(f32))

    # ---- fuse the three heads: one (dim_p, 3*output_dim padded) matmul ------
    w_head = jnp.concatenate([w for (w, _) in head_params], axis=1)       # (dim, 3*out)
    b_head = jnp.concatenate([b.reshape(1, -1) for (_, b) in head_params], axis=1)
    w_head_p = _pad2(w_head, dim_p, head_out_p)
    b_head_p = _pad2(b_head, 1, head_out_p)

    resident = trunk_w + [b_stack, w_head_p, b_head_p]
    weight_bytes = sum(int(a.size) * 4 for a in resident)

    # ---- resident-weight buffering (single-buffer only when it matters) -----
    if single_buffer_weights is None:
        single_buffer_weights = weight_bytes > (4 << 20) and hasattr(pl, "Buffered")
    weight_buf = 1 if single_buffer_weights else 2

    # ---- generation-aware VMEM budget ---------------------------------------
    try:
        vmem_cap = int(pltpu.get_tpu_info().vmem_capacity_bytes)
    except Exception:  # fall back to the smallest per-TC VMEM (v7x: 64 MiB)
        vmem_cap = 64 << 20
    cap_budget = int(0.75 * vmem_cap)   # ~96 MiB on v5e/v6e, ~48 MiB on v7x

    # ---- TC-aware, padding-minimizing batch tiling ---------------------------
    if B < 2 * _SUBLANE:
        # tiny batch: one full-B tile (block dim == full array dim), no padding
        tb, b_p = B, B
    else:
        # >= 2 balanced tiles (so v7x's two TensorCores both get work), tiles a
        # multiple of 8 rows and capped near max_batch_tile.
        n_tiles = max(2, _cdiv(B, max_batch_tile))
        tb = _round_up(_cdiv(B, n_tiles), _SUBLANE)
        b_p = _round_up(B, tb)

    def _footprint(tb_):
        io = 2 * tb_ * (input_dim + head_out_p) * 4      # double-buffered x/out tiles
        act = 3 * tb_ * max(input_dim, dim_p, head_out_p) * 4   # activation temporaries
        return weight_buf * weight_bytes + io + act + (2 << 20)  # + Mosaic scratch

    # Shrink the batch tile if the footprint would not fit the VMEM budget.
    while B >= 2 * _SUBLANE and tb > 2 * _SUBLANE and _footprint(tb) > cap_budget:
        tb = _round_up(tb // 2, _SUBLANE)
        b_p = _round_up(B, tb)
    num_tiles = b_p // tb

    vmem_limit = int(min(cap_budget, max(16 << 20, _footprint(tb))))
    # TODO(synk): if resident trunk weights alone exceed the VMEM budget (huge
    # dim / many layers), switch to a layer-wise double-buffered weight DMA
    # pipeline instead of keeping every layer resident.

    # ---- x: pad batch rows only (never the feature/lane dim) ----------------
    x_in = x.astype(f32)
    if b_p > B:
        x_in = jnp.zeros((b_p, input_dim), f32).at[:B].set(x_in)

    # ---- BlockSpecs: x/out tiled over batch, weights resident ---------------
    def _resident_spec(a):
        nd = a.ndim
        idx = lambda i, _nd=nd: (0,) * _nd
        if single_buffer_weights:
            # block index never changes -> DMA'd once; don't pay 2x VMEM for it
            return pl.BlockSpec(a.shape, idx, pipeline_mode=pl.Buffered(1))
        return pl.BlockSpec(a.shape, idx)

    in_specs = [pl.BlockSpec((tb, input_dim), lambda i: (i, 0))]
    in_specs += [_resident_spec(a) for a in resident]

    out_shape = jax.ShapeDtypeStruct((b_p, head_out_p), f32)
    out_specs = pl.BlockSpec((tb, head_out_p), lambda i: (i, 0))

    # ---- cost estimate (advisory, for XLA scheduling) ------------------------
    flops = 2 * b_p * (
        input_dim * dim_p
        + max(n_hidden - 1, 0) * dim_p * dim_p
        + dim_p * head_out_p
    )
    bytes_accessed = (b_p * input_dim
                      + sum(int(a.size) for a in resident)
                      + b_p * head_out_p) * 4
    cost = pl.CostEstimate(flops=flops, transcendentals=0,
                           bytes_accessed=bytes_accessed)

    out_p = pl.pallas_call(
        _make_mlp_kernel(n_hidden),
        grid=(num_tiles,),
        in_specs=in_specs,
        out_specs=out_specs,
        out_shape=out_shape,
        compiler_params=pltpu.CompilerParams(
            dimension_semantics=("parallel",),   # shards batch tiles across v7x's 2 TCs
            vmem_limit_bytes=vmem_limit,
        ),
        cost_estimate=cost,
    )(x_in, *resident)

    out = out_p[:B]
    return (
        out[:, 0 * output_dim:1 * output_dim],
        out[:, 1 * output_dim:2 * output_dim],
        out[:, 2 * output_dim:3 * output_dim],
    )


def init_dynamic_mlp_params(key, input_dim, output_dim, dim, n_blk):
    """Deterministic synthetic init matching DynamicMlp's parameter shapes.

    Trunk: [input_dim->dim] + (n_blk-2) x [dim->dim], each Linear+ReLU.
    Heads: 3 x [dim->output_dim] Linear (no activation).
    Weights are returned already transposed to (in, out); biases as (1, out).
    """
    layer_dims = [(input_dim, dim)] + [(dim, dim)] * (n_blk - 2)
    head_dims = [(dim, output_dim)] * 3

    hidden_params = []
    for (d_in, d_out) in layer_dims:
        key, kw, kb = jax.random.split(key, 3)
        bound = 1.0 / jnp.sqrt(d_in)
        w_t = jax.random.uniform(kw, (d_in, d_out), jnp.float32, -bound, bound)
        b = jax.random.uniform(kb, (1, d_out), jnp.float32, -bound, bound)
        hidden_params.append((w_t, b))

    head_params = []
    for (d_in, d_out) in head_dims:
        key, kw, kb = jax.random.split(key, 3)
        bound = 1.0 / jnp.sqrt(d_in)
        w_t = jax.random.uniform(kw, (d_in, d_out), jnp.float32, -bound, bound)
        b = jax.random.uniform(kb, (1, d_out), jnp.float32, -bound, bound)
        head_params.append((w_t, b))

    return hidden_params, head_params


def dynamic_mlp_reference(x, hidden_params, head_params):
    """Pure-JAX reference mirroring the PyTorch forward."""
    h = x
    for w, b in hidden_params:
        h = jnp.maximum(h @ w + b, 0.0)
    return tuple(h @ w + b for w, b in head_params)


def _check(x, hidden_params, head_params, output_dim):
    outs = dynamic_mlp_forward(x, hidden_params, head_params)
    jax.block_until_ready(outs)
    refs = dynamic_mlp_reference(x, hidden_params, head_params)
    for o, r in zip(outs, refs):
        assert o.shape == (x.shape[0], output_dim)
        assert jnp.allclose(o, r, atol=1e-5, rtol=1e-5)


if __name__ == "__main__":
    # Module config: DynamicMlp(input_dim=64, output_dim=16, dim=32, n_blk=3,
    #                           norm='none', activ='relu')
    input_dim, output_dim, dim, n_blk = 64, 16, 32, 3

    key = jax.random.PRNGKey(0)
    key, kx1, kx2 = jax.random.split(key, 3)
    hidden_params, head_params = init_dynamic_mlp_params(
        key, input_dim, output_dim, dim, n_blk
    )

    # 1) tiny batch (single full-B tile, no padding anywhere)
    # Forward does x.view(x.size(0), -1); we pass an already-2D input (B, input_dim).
    x_small = jax.random.normal(kx1, (2, input_dim), jnp.float32)
    _check(x_small, hidden_params, head_params, output_dim)

    # 2) ragged batch (>= 2 balanced batch tiles; padded rows sliced off)
    x_big = jax.random.normal(kx2, (37, input_dim), jnp.float32)
    _check(x_big, hidden_params, head_params, output_dim)

    print("KERNEL_OK")
</pallas_src>

<mosaic_0001>
module attributes {stable_mosaic.version = 11 : i64} {
  func.func @kernel(%arg0: i32, %arg1: memref<2x64xf32, #tpu.memory_space<vmem>>, %arg2: memref<64x128xf32, #tpu.memory_space<vmem>>, %arg3: memref<128x128xf32, #tpu.memory_space<vmem>>, %arg4: memref<2x128xf32, #tpu.memory_space<vmem>>, %arg5: memref<128x128xf32, #tpu.memory_space<vmem>>, %arg6: memref<1x128xf32, #tpu.memory_space<vmem>>, %arg7: memref<2x128xf32, #tpu.memory_space<vmem>>) attributes {dimension_semantics = [#tpu.dimension_semantics<parallel>], iteration_bounds = array<i64: 1>, scalar_prefetch = 0 : i64, scratch_operands = 0 : i64, tpu.core_type = #tpu.core_type<tc>, window_params = [{transform_indices = @transform_0, window_bounds = array<i64: 2, 64>}, {pipeline_mode = #tpu.pipeline_mode<synchronous>, transform_indices = @transform_1, window_bounds = array<i64: 64, 128>}, {pipeline_mode = #tpu.pipeline_mode<synchronous>, transform_indices = @transform_2, window_bounds = array<i64: 128, 128>}, {pipeline_mode = #tpu.pipeline_mode<synchronous>, transform_indices = @transform_3, window_bounds = array<i64: 2, 128>}, {pipeline_mode = #tpu.pipeline_mode<synchronous>, transform_indices = @transform_4, window_bounds = array<i64: 128, 128>}, {pipeline_mode = #tpu.pipeline_mode<synchronous>, transform_indices = @transform_5, window_bounds = array<i64: 1, 128>}, {transform_indices = @transform_6, window_bounds = array<i64: 2, 128>}]} {
    %c0 = arith.constant 0 : index
    %c0_0 = arith.constant 0 : index
    %0 = vector.load %arg1[%c0, %c0_0] : memref<2x64xf32, #tpu.memory_space<vmem>>, vector<2x64xf32>
    %c0_1 = arith.constant 0 : index
    %c0_2 = arith.constant 0 : index
    %1 = vector.load %arg2[%c0_1, %c0_2] : memref<64x128xf32, #tpu.memory_space<vmem>>, vector<64x128xf32>
    %cst = arith.constant dense<0.000000e+00> : vector<2x128xf32>
    %2 = tpu.matmul %0, %1, %cst {dimension_numbers = #tpu.dot_dimension_numbers<[1], [0], [0], [1], [0, 0, 1, 1], [], []>} : vector<2x64xf32>, vector<64x128xf32>, vector<2x128xf32> -> vector<2x128xf32>
    %c0_3 = arith.constant 0 : index
    %c0_4 = arith.constant 0 : index
    %3 = vector.load %arg4[%c0_3, %c0_4] : memref<2x128xf32, #tpu.memory_space<vmem>>, vector<1x128xf32>
    %4 = vector.broadcast %3 : vector<1x128xf32> to vector<2x128xf32>
    %5 = arith.addf %2, %4 : vector<2x128xf32>
    %cst_5 = arith.constant 0.000000e+00 : f32
    %6 = vector.broadcast %cst_5 : f32 to vector<2x128xf32>
    %7 = arith.maximumf %5, %6 : vector<2x128xf32>
    %c0_6 = arith.constant 0 : index
    %c0_7 = arith.constant 0 : index
    %8 = vector.load %arg3[%c0_6, %c0_7] : memref<128x128xf32, #tpu.memory_space<vmem>>, vector<128x128xf32>
    %cst_8 = arith.constant dense<0.000000e+00> : vector<2x128xf32>
    %9 = tpu.matmul %7, %8, %cst_8 {dimension_numbers = #tpu.dot_dimension_numbers<[1], [0], [0], [1], [0, 0, 1, 1], [], []>} : vector<2x128xf32>, vector<128x128xf32>, vector<2x128xf32> -> vector<2x128xf32>
    %c1 = arith.constant 1 : index
    %c0_9 = arith.constant 0 : index
    %10 = vector.load %arg4[%c1, %c0_9] : memref<2x128xf32, #tpu.memory_space<vmem>>, vector<1x128xf32>
    %11 = vector.broadcast %10 : vector<1x128xf32> to vector<2x128xf32>
    %12 = arith.addf %9, %11 : vector<2x128xf32>
    %cst_10 = arith.constant 0.000000e+00 : f32
    %13 = vector.broadcast %cst_10 : f32 to vector<2x128xf32>
    %14 = arith.maximumf %12, %13 : vector<2x128xf32>
    %c0_11 = arith.constant 0 : index
    %c0_12 = arith.constant 0 : index
    %15 = vector.load %arg5[%c0_11, %c0_12] : memref<128x128xf32, #tpu.memory_space<vmem>>, vector<128x128xf32>
    %cst_13 = arith.constant dense<0.000000e+00> : vector<2x128xf32>
    %16 = tpu.matmul %14, %15, %cst_13 {dimension_numbers = #tpu.dot_dimension_numbers<[1], [0], [0], [1], [0, 0, 1, 1], [], []>} : vector<2x128xf32>, vector<128x128xf32>, vector<2x128xf32> -> vector<2x128xf32>
    %c0_14 = arith.constant 0 : index
    %c0_15 = arith.constant 0 : index
    %17 = vector.load %arg6[%c0_14, %c0_15] : memref<1x128xf32, #tpu.memory_space<vmem>>, vector<1x128xf32>
    %18 = vector.broadcast %17 : vector<1x128xf32> to vector<2x128xf32>
    %19 = arith.addf %16, %18 : vector<2x128xf32>
    %c0_16 = arith.constant 0 : index
    %c0_17 = arith.constant 0 : index
    %20 = vector.load %arg7[%c0_16, %c0_17] : memref<2x128xf32, #tpu.memory_space<vmem>>, vector<2x128xf32>
    tpu.vector_store %arg7[%c0_16, %c0_17], %19 {strides = array<i32>} : memref<2x128xf32, #tpu.memory_space<vmem>>, vector<2x128xf32>,
    return
  }
  func.func @transform_0(%arg0: i32) -> (i32, i32) {
    %c0_i32 = arith.constant 0 : i32
    %c0_i32_0 = arith.constant 0 : i32
    return %arg0, %c0_i32 : i32, i32
  }
  func.func @transform_1(%arg0: i32) -> (i32, i32) {
    %c0_i32 = arith.constant 0 : i32
    %c0_i32_0 = arith.constant 0 : i32
    %c0_i32_1 = arith.constant 0 : i32
    return %c0_i32, %c0_i32_0 : i32, i32
  }
  func.func @transform_2(%arg0: i32) -> (i32, i32) {
    %c0_i32 = arith.constant 0 : i32
    %c0_i32_0 = arith.constant 0 : i32
    %c0_i32_1 = arith.constant 0 : i32
    return %c0_i32, %c0_i32_0 : i32, i32
  }
  func.func @transform_3(%arg0: i32) -> (i32, i32) {
    %c0_i32 = arith.constant 0 : i32
    %c0_i32_0 = arith.constant 0 : i32
    %c0_i32_1 = arith.constant 0 : i32
    return %c0_i32, %c0_i32_0 : i32, i32
  }
  func.func @transform_4(%arg0: i32) -> (i32, i32) {
    %c0_i32 = arith.constant 0 : i32
    %c0_i32_0 = arith.constant 0 : i32
    %c0_i32_1 = arith.constant 0 : i32
    return %c0_i32, %c0_i32_0 : i32, i32
  }
  func.func @transform_5(%arg0: i32) -> (i32, i32) {
    %c0_i32 = arith.constant 0 : i32
    %c0_i32_0 = arith.constant 0 : i32
    %c0_i32_1 = arith.constant 0 : i32
    return %c0_i32, %c0_i32_0 : i32, i32
  }
  func.func @transform_6(%arg0: i32) -> (i32, i32) {
    %c0_i32 = arith.constant 0 : i32
    %c0_i32_0 = arith.constant 0 : i32
    return %arg0, %c0_i32 : i32, i32
  }
}

</mosaic_0001>

<bundles_post_ra>
// kernel: tpu_custom_call.1
= control target key start
LH: loop header
LB: loop body
LE: loop exit
PB: predicated region body
PF: predicated region fallthrough
CT: control target
= control target key end

     0   :  { %11 = vsyncpa [#allocation3], 0  ;;  %s425_s0 = inlined_call_operand.hbm [shape: f32[2,64], index: 0, kind: input, shape index: {}]   ;;  %s426_s1 = inlined_call_operand.hbm [shape: f32[64,128], index: 1, kind: input, shape index: {}]   ;;  %s427_s2 = inlined_call_operand.hbm [shape: f32[128,128], index: 2, kind: input, shape index: {}]   ;;  %s428_s3 = inlined_call_operand.vmem [shape: f32[2,128], index: 3, kind: input, shape index: {}]   ;;  %s429_s4 = inlined_call_operand.hbm [shape: f32[128,128], index: 4, kind: input, shape index: {}]   ;;  %s430_s5 = inlined_call_operand.vmem [shape: f32[1,128], index: 5, kind: input, shape index: {}]   ;;  %s431_s6 = inlined_call_operand.hbm [shape: f32[2,128], index: 6, kind: output, shape index: {}]  }
   0x1   :  { %12 = vsyncpa [#allocation6], 0 }
   0x2   :  { %13 = vsyncpa [#allocation9], 0  ;;  %s30_s23 = sshll.u32 %s426_s1, 4  ;;  %s31_s23 = int_to_ptr.hbm [resolvable:$true] %s30_s23 }
   0x3   :  { %14 = vsyncpa [#allocation4], 0  ;;  %s359_s24 = smov [#allocation5]   ;;  %s20_s28 = sshll.u32 %s425_s0, 4  ;;  %s21_s28 = int_to_ptr.hbm [resolvable:$true] %s20_s28 }
   0x4   :  { %s32_s25 = sshll.u32 %s359_s24, 4  ;;  %s360_s29 = smov 128   ;;  %s33_s25 = int_to_ptr.vmem [resolvable:$true] %s32_s25 }
   0x5   :  { %s361_s30 = smov 8   ;;  %s362_s7 = smov [#allocation2]  }
   0x6   :  { %38 = dma.hbm_to_vmem [thread:$0]  %s31_s23, 1024, %s33_s25, [#allocation6], %s360_s29, %s360_s29, %s361_s30  }
   0x7   :  { %s22_s8 = sshll.u32 %s362_s7, 4  ;;  %s43_s11 = sshll.u32 %s427_s2, 4  ;;  %s23_s8 = int_to_ptr.vmem [resolvable:$true] %s22_s8  ;;  %s44_s11 = int_to_ptr.hbm [resolvable:$true] %s43_s11 }
   0x8   :  { %25 = dma.hbm_to_vmem [thread:$0]  %s21_s28, 32, %s23_s8, [#allocation3]  }
   0x9   :  { %s58_s13 = sshll.u32 %s429_s4, 4  ;;  %s363_s14 = smov [#allocation7]   ;;  %s59_s13 = int_to_ptr.hbm [resolvable:$true] %s58_s13 }
   0xa   :  { %s45_s15 = sshll.u32 %s363_s14, 4  ;;  %s364_s0 = smov [#allocation8]   ;;  %s46_s15 = int_to_ptr.vmem [resolvable:$true] %s45_s15 }
   0xb   :  { %51 = dma.hbm_to_vmem [thread:$0]  %s44_s11, 2048, %s46_s15, [#allocation6], %s360_s29, %s360_s29, %s361_s30  }
   0xc   :  { %s60_s16 = sshll.u32 %s364_s0, 4  ;;  %s61_s16 = int_to_ptr.vmem [resolvable:$true] %s60_s16 }
   0xd   :  { %66 = dma.hbm_to_vmem [thread:$0]  %s59_s13, 2048, %s61_s16, [#allocation9], %s360_s29, %s360_s29, %s361_s30  }
   0xe   :  { %351 = dma.done.wait [#allocation3], 32  }
   0xf   :  { %352 = vsyncadd [#allocation3], 4294967264 }
  0x10   :  { %353 = dma.done.wait [#allocation6], 3072  }
  0x11   :  { %354 = vsyncadd [#allocation6], 4294964224 }
  0x12   :  { %355 = dma.done.wait [#allocation9], 2048  }
  0x13   :  { %356 = vsyncadd [#allocation9], 4294965248  ;;  %v93_v0 = vld [vmem:[#allocation5 + $0x38] sm:$0xff]  ;;  %v92_v1 = vld [vmem:[#allocation5 + $0x30] sm:$0xff]  ;;  %vm96_vm0 = vcmask 523264   ;;  %s365_s21 = smov [#allocation10]  }
  0x14   :  { %108 = vmatpush.msra.mxu0 %v93_v0  ;;  %v91_v2 = vld [vmem:[#allocation5 + $0x28] sm:$0xff]  ;;  %v136_v3 = vld [vmem:[#allocation7 + $0x78] sm:$0xff]  ;;  %v135_v4 = vld [vmem:[#allocation7 + $0x70] sm:$0xff]  ;;  %s206_s22 = sshll.u32 %s365_s21, 4  ;;  %s208_s25 = sshll.u32 %s431_s6, 4  ;;  %s207_s22 = int_to_ptr.vmem [resolvable:$true] %s206_s22  ;;  %s209_s25 = int_to_ptr.hbm [resolvable:$true] %s208_s25 }
  0x15   :  { %v90_v5 = vld [vmem:[#allocation5 + $0x20] sm:$0xff]  ;;  %139 = vmatpush.msra.mxu1 %v136_v3  ;;  %v134_v6 = vld [vmem:[#allocation7 + $0x68] sm:$0xff]  ;;  %v89_v7 = vld [vmem:[#allocation5 + $0x18] sm:$0xff] }
  0x16   :  { %109 = vmatpush.msra.mxu0 %v92_v1  ;;  %v133_v8 = vld [vmem:[#allocation7 + $0x60] sm:$0xff]  ;;  %v88_v9 = vld [vmem:[#allocation5 + $0x10] sm:$0xff]  ;;  %v132_v10 = vld [vmem:[#allocation7 + $0x58] sm:$0xff] }
  0x17   :  { %140 = vmatpush.msra.mxu1 %v135_v4  ;;  %v87_v11 = vld [vmem:[#allocation5 + $0x8] sm:$0xff]  ;;  %v131_v12 = vld [vmem:[#allocation7 + $0x50] sm:$0xff]  ;;  %v86_v13 = vld [vmem:[#allocation5] sm:$0xff] }
  0x18   :  { %110 = vmatpush.msra.mxu0 %v91_v2  ;;  %v85_v14 = vld [vmem:[#allocation2] sm:$0x3]  ;;  %v130_v15 = vld [vmem:[#allocation7 + $0x48] sm:$0xff]  ;;  %v129_v16 = vld [vmem:[#allocation7 + $0x40] sm:$0xff] }
  0x19   :  { %141 = vmatpush.msra.mxu1 %v134_v6  ;;  %v128_v17 = vld [vmem:[#allocation7 + $0x38] sm:$0xff]  ;;  %v127_v18 = vld [vmem:[#allocation7 + $0x30] sm:$0xff]  ;;  %v126_v19 = vld [vmem:[#allocation7 + $0x28] sm:$0xff] }
  0x1a   :  { %111 = vmatpush.msra.mxu0 %v90_v5  ;;  %v125_v20 = vld [vmem:[#allocation7 + $0x20] sm:$0xff]  ;;  %v124_v21 = vld [vmem:[#allocation7 + $0x18] sm:$0xff]  ;;  %v123_v22 = vld [vmem:[#allocation7 + $0x10] sm:$0xff] }
  0x1b   :  { %142 = vmatpush.msra.mxu1 %v133_v8  ;;  %v122_v23 = vld [vmem:[#allocation7 + $0x8] sm:$0xff]  ;;  %v121_v24 = vld [vmem:[#allocation7] sm:$0xff]  ;;  %v175_v25 = vld [vmem:[#allocation8 + $0x78] sm:$0xff] }
  0x1c   :  { %112 = vmatpush.msra.mxu0 %v89_v7  ;;  %v174_v26 = vld [vmem:[#allocation8 + $0x70] sm:$0xff]  ;;  %180 = vmatpush.msra.mxu2 %v175_v25  ;;  %v173_v27 = vld [vmem:[#allocation8 + $0x68] sm:$0xff]  ;;  %v172_v28 = vld [vmem:[#allocation8 + $0x60] sm:$0xff] }
  0x1d   :  { %143 = vmatpush.msra.mxu1 %v132_v10  ;;  %v171_v29 = vld [vmem:[#allocation8 + $0x58] sm:$0xff]  ;;  %v170_v30 = vld [vmem:[#allocation8 + $0x50] sm:$0xff]  ;;  %v169_v31 = vld [vmem:[#allocation8 + $0x48] sm:$0xff] }
  0x1e   :  { %113 = vmatpush.msra.mxu0 %v88_v9  ;;  %181 = vmatpush.msra.mxu2 %v174_v26  ;;  %v168_v32 = vld [vmem:[#allocation8 + $0x40] sm:$0xff]  ;;  %v167_v33 = vld [vmem:[#allocation8 + $0x38] sm:$0xff]  ;;  %v166_v34 = vld [vmem:[#allocation8 + $0x30] sm:$0xff] }
  0x1f   :  { %144 = vmatpush.msra.mxu1 %v131_v12  ;;  %v165_v35 = vld [vmem:[#allocation8 + $0x28] sm:$0xff]  ;;  %v164_v36 = vld [vmem:[#allocation8 + $0x20] sm:$0xff]  ;;  %v163_v37 = vld [vmem:[#allocation8 + $0x18] sm:$0xff] }
  0x20   :  { %114 = vmatpush.msra.mxu0 %v87_v11  ;;  %182 = vmatpush.msra.mxu2 %v173_v27  ;;  %v228_v38 = vld [vmem:[%s428_s3] ss:$0 sm:$0xff]  ;;  %v162_v42 = vld [vmem:[#allocation8 + $0x10] sm:$0xff]  ;;  %v161_v43 = vld [vmem:[#allocation8 + $0x8] sm:$0xff] }
  0x21   :  { %145 = vmatpush.msra.mxu1 %v130_v15  ;;  %v160_v44 = vld [vmem:[#allocation8] sm:$0xff]  ;;  %v229_v45 = vld [vmem:[%s428_s3 + $0x1] ss:$0 sm:$0xff]  ;;  %v230_v49 = vld [vmem:[%s430_s5] ss:$0 sm:$0xff] }
  0x22   :  { %115 = vmatpush.msra.mxu0 %v86_v13  ;;  %183 = vmatpush.msra.mxu2 %v172_v28 }
  0x23   :  { %220 = vmatmul.msk.f32.vlgmr.msra.gmra.mxu0 %vm96_vm0, %v85_v14  ;;  %146 = vmatpush.msra.mxu1 %v129_v16 }
  0x24   :  { %184 = vmatpush.msra.mxu2 %v171_v29 }
  0x25   :  { %147 = vmatpush.msra.mxu1 %v128_v17 }
  0x26   :  { %185 = vmatpush.msra.mxu2 %v170_v30 }
  0x27   :  { %148 = vmatpush.msra.mxu1 %v127_v18 }
  0x28   :  { %186 = vmatpush.msra.mxu2 %v169_v31 }
  0x29   :  { %149 = vmatpush.msra.mxu1 %v126_v19 }
  0x2a   :  { %187 = vmatpush.msra.mxu2 %v168_v32 }
  0x2b   :  { %150 = vmatpush.msra.mxu1 %v125_v20 }
  0x2c   :  { %188 = vmatpush.msra.mxu2 %v167_v33 }
  0x2d   :  { %151 = vmatpush.msra.mxu1 %v124_v21 }
  0x2e   :  { %189 = vmatpush.msra.mxu2 %v166_v34 }
  0x2f   :  { %152 = vmatpush.msra.mxu1 %v123_v22 }
  0x30   :  { %190 = vmatpush.msra.mxu2 %v165_v35 }
  0x31   :  { %153 = vmatpush.msra.mxu1 %v122_v23 }
  0x32   :  { %191 = vmatpush.msra.mxu2 %v164_v36 }
  0x33   :  { %154 = vmatpush.msra.mxu1 %v121_v24 }
  0x34   :  { %192 = vmatpush.msra.mxu2 %v163_v37 }
  0x36   :  { %193 = vmatpush.msra.mxu2 %v162_v42 }
  0x38   :  { %194 = vmatpush.msra.mxu2 %v161_v43 }
  0x3a   :  { %195 = vmatpush.msra.mxu2 %v160_v44 }
  0xa0   :  { %v117_v39 = vpop.f32.mrf.mxu0 }
  0xa1   :  { %v118_v40 = vadd.f32 %v228_v38, %v117_v39 }
  0xa3   :  { %v120_v41 = vmax.f32 %v118_v40, 0.0 }
  0xa5   :  { %155 = vmatmul.f32.vlgmr.msra.gmra.mxu1 %v120_v41 }
 0x122   :  { %v156_v46 = vpop.f32.mrf.mxu1 }
 0x123   :  { %v157_v47 = vadd.f32 %v229_v45, %v156_v46 }
 0x125   :  { %v159_v48 = vmax.f32 %v157_v47, 0.0 }
 0x127   :  { %196 = vmatmul.f32.vlgmr.msra.gmra.mxu2 %v159_v48 }
 0x1aa   :  { %v197_v50 = vpop.f32.mrf.mxu2 }
 0x1ab   :  { %v198_v51 = vadd.f32 %v230_v49, %v197_v50 }
 0x1ad   :  { %200 = vst [vmem:[#allocation10] sm:$0x3] %v198_v51 }
 0x1ae   :  { %211 = dma.vmem_to_hbm [thread:$0]  %s207_s22, 32, %s209_s25, [#allocation4]  }
 0x1af   :  { %357 = dma.done.wait [#allocation4], 32  }
 0x1b0   :  { %358 = vsyncadd [#allocation4], 4294967264 }
 0x1b1   :  { %216 = vsyncpa [#allocation3], 1 }
 0x1b2   :  { %217 = vsyncpa [#allocation6], 1 }
 0x1b3   :  { %218 = vsyncpa [#allocation9], 1 }
 0x1b4   :  { %219 = vsyncpa [#allocation4], 1 }

</bundles_post_ra>
